<compile_context>
chip_gen: v5e
topology: v5e:2x2
jax: 0.10.0
libtpu: 0.0.40
codegen_flags: <defaults>
</compile_context>

<pallas_src>
import functools

import jax
import jax.numpy as jnp
from jax import lax
from jax.experimental import pallas as pl
from jax.experimental.pallas import tpu as pltpu

LANE = 128
SUBLANE = 8
DEFAULT_TM = 4096          # rows per grid step (f32: 2 MiB per input block)
DEFAULT_CHUNK_ROWS = 256   # rows per in-kernel accumulation chunk


def _round_up(a, b):
    return ((a + b - 1) // b) * b


def _num_tensorcores():
    """Best-effort TensorCore count of the local chip (v7x: 2; v5e/v6e: 1)."""
    try:
        info = pltpu.get_tpu_info()
        for name in ("num_cores", "num_tensorcores", "tensorcore_count", "core_count"):
            v = getattr(info, name, None)
            if isinstance(v, int) and 1 <= v <= 8:
                return v
    except Exception:
        pass
    try:
        kind = str(getattr(jax.devices()[0], "device_kind", "")).lower()
        if "7x" in kind or "v7" in kind:
            return 2
    except Exception:
        pass
    return 1


def _linear2srgb(v, eps):
    # multinerf curve with folded constants: 323/25 == 12.92, 211/200 == 1.055,
    # 11/200 == 0.055; x**(5/12) as exp/log (EUP ops, off the VALU slot).
    srgb0 = 12.92 * v
    srgb1 = 1.055 * jnp.exp((5.0 / 12.0) * jnp.log(jnp.maximum(eps, v))) - 0.055
    return jnp.where(v <= 0.0031308, srgb0, srgb1)


def _loss_kernel(x_ref, y_ref, o_ref, *, loss_type, rows, tm, inner, chunk_rows):
    c = pl.program_id(0)   # core-split index
    i = pl.program_id(1)   # row-block index within this core's range

    @pl.when(i == 0)
    def _():
        o_ref[...] = jnp.zeros_like(o_ref)

    row_start = (c * inner + i) * tm
    valid = rows - row_start          # valid rows in this block (may be <= 0 or < tm)
    eps = jnp.float32(jnp.finfo(jnp.float32).eps)
    trips = tm // chunk_rows

    def accumulate(mask_rows, unroll):
        def chunk_body(k, acc):
            r0 = pl.multiple_of(k * chunk_rows, chunk_rows)
            xs = _linear2srgb(x_ref[pl.ds(r0, chunk_rows), :].astype(jnp.float32), eps)
            ys = _linear2srgb(y_ref[pl.ds(r0, chunk_rows), :].astype(jnp.float32), eps)
            d = xs - ys
            per = jnp.abs(d) if loss_type == "L1" else d * d
            if mask_rows:
                rid = lax.broadcasted_iota(jnp.int32, (chunk_rows, LANE), 0) + r0
                per = jnp.where(rid < valid, per, 0.0)   # select blocks NaN/Inf garbage
            # Stay in-lane: (chunk,128) -> (chunk/8, 8, 128) -> VPU adds into (8,128).
            return acc + per.reshape(chunk_rows // SUBLANE, SUBLANE, LANE).sum(axis=0)

        acc = lax.fori_loop(0, trips, chunk_body,
                            jnp.zeros((SUBLANE, LANE), jnp.float32), unroll=unroll)
        # Output block index is constant across i, so it stays resident: accumulate
        # directly into it (no scratch, no final copy).
        o_ref[...] = o_ref[...] + acc[None]

    # Hot path: whole block valid -> no iota/compare/select, fully unrolled.
    @pl.when(valid >= tm)
    def _():
        accumulate(mask_rows=False, unroll=True)

    # Ragged last block (runs at most once per core) -> masked, rolled loop.
    @pl.when(jnp.logical_and(valid > 0, valid < tm))
    def _():
        accumulate(mask_rows=True, unroll=False)

    # valid <= 0: clamped overrun step of the core split -> nothing to do.


def loss_with_gamma_correction(x, y, loss_type="L1", tm=DEFAULT_TM,
                               chunk_rows=DEFAULT_CHUNK_ROWS, nsplit=None,
                               split_semantics=None):
    """Pallas implementation of LossWithGammaCorrection.forward(x, y)."""
    if loss_type not in ("L1", "MSE"):
        raise ValueError("Unknown loss_type. Must be 'L1' or 'MSE'")
    assert x.shape == y.shape
    n = x.size
    assert n > 0

    xf = x.reshape(-1)
    yf = y.reshape(-1)
    if n % LANE != 0:
        # TODO(synk): sizes that are not a multiple of 128 still take a one-off pad
        # copy; typical image tensors hit the copy-free path (zero pads contribute
        # 0 to either loss because sRGB(0) == 0).
        pad = LANE - n % LANE
        xf = jnp.pad(xf, (0, pad))
        yf = jnp.pad(yf, (0, pad))
    rows = xf.size // LANE
    x2 = xf.reshape(rows, LANE)
    y2 = yf.reshape(rows, LANE)

    # Tile geometry: chunk_rows (multiple of 8) bounds vreg pressure inside the
    # kernel; tm (multiple of chunk_rows) amortizes per-grid-step overhead.
    # tm=4096 f32 -> 2 inputs x 2 buffers x 2 MiB = 8 MiB of VMEM, under the
    # scoped-VMEM defaults on all of v5e / v6e / v7x.
    chunk_rows = max(SUBLANE, (chunk_rows // SUBLANE) * SUBLANE)
    chunk_rows = min(chunk_rows, _round_up(rows, SUBLANE))
    tm = max(chunk_rows, (tm // chunk_rows) * chunk_rows)
    tm = min(tm, _round_up(rows, chunk_rows))
    nblocks = pl.cdiv(rows, tm)

    # Leading "parallel" axis: one slice of the row blocks per TensorCore.  On
    # 1-TC chips this collapses to size 1 (no clamp, no wasted step).
    if nsplit is None:
        nsplit = _num_tensorcores()
    nsplit = max(1, min(int(nsplit), nblocks))
    inner = pl.cdiv(nblocks, nsplit)
    grid = (nsplit, inner)

    if nsplit > 1:
        def in_map(c, i):
            # Clamp overrun steps to a valid block; their work is skipped in-kernel.
            return (jnp.minimum(c * inner + i, nblocks - 1), 0)
    else:
        def in_map(c, i):
            return (i, 0)

    if split_semantics is None:
        # On v7x pass split_semantics=pltpu.CORE_PARALLEL so the split is
        # guaranteed to land on both TensorCores.
        split_semantics = pltpu.PARALLEL

    itemsize = jnp.dtype(x.dtype).itemsize
    cost = pl.CostEstimate(
        flops=20 * n,
        transcendentals=4 * n,                      # exp + log per element per input
        bytes_accessed=2 * n * itemsize + nsplit * SUBLANE * LANE * 4,
    )

    partial_sums = pl.pallas_call(
        functools.partial(_loss_kernel, loss_type=loss_type, rows=rows, tm=tm,
                          inner=inner, chunk_rows=chunk_rows),
        out_shape=jax.ShapeDtypeStruct((nsplit, SUBLANE, LANE), jnp.float32),
        grid_spec=pltpu.PrefetchScalarGridSpec(
            num_scalar_prefetch=0,
            grid=grid,
            in_specs=[
                pl.BlockSpec((tm, LANE), in_map),
                pl.BlockSpec((tm, LANE), in_map),
            ],
            out_specs=pl.BlockSpec((1, SUBLANE, LANE), lambda c, i: (c, 0, 0)),
        ),
        compiler_params=pltpu.CompilerParams(
            dimension_semantics=(split_semantics, pltpu.ARBITRARY),
        ),
        cost_estimate=cost,
    )(x2, y2)

    # Single tiny cross-lane reduction outside the kernel.
    return jnp.sum(partial_sums) / jnp.float32(n)


def _reference(x, y, loss_type="L1"):
    eps = jnp.float32(jnp.finfo(jnp.float32).eps)

    def srgb(v):
        v = v.astype(jnp.float32)
        srgb0 = 323.0 / 25.0 * v
        srgb1 = (211.0 * jnp.maximum(eps, v) ** (5.0 / 12.0) - 11.0) / 200.0
        return jnp.where(v <= 0.0031308, srgb0, srgb1)

    d = srgb(x) - srgb(y)
    return jnp.mean(jnp.abs(d)) if loss_type == "L1" else jnp.mean(d * d)


if __name__ == "__main__":
    key = jax.random.PRNGKey(0)
    k1, k2, k3, k4, k5, k6 = jax.random.split(key, 6)

    # NCHW linear-RGB inputs in [0, 1].
    x = jax.random.uniform(k1, (2, 4, 16, 16), dtype=jnp.float32)
    y = jax.random.uniform(k2, (2, 4, 16, 16), dtype=jnp.float32)
    for lt in ("L1", "MSE"):
        out = jax.block_until_ready(loss_with_gamma_correction(x, y, loss_type=lt))
        ref = _reference(x, y, loss_type=lt)
        assert jnp.allclose(out, ref, rtol=1e-5, atol=1e-6), (lt, out, ref)

    # Ragged rows (rows not a multiple of 8) -> exercises the masked-tail path.
    xr = jax.random.uniform(k3, (1, 3, 40, 32), dtype=jnp.float32)
    yr = jax.random.uniform(k4, (1, 3, 40, 32), dtype=jnp.float32)
    out = jax.block_until_ready(loss_with_gamma_correction(xr, yr, loss_type="L1"))
    ref = _reference(xr, yr, loss_type="L1")
    assert jnp.allclose(out, ref, rtol=1e-5, atol=1e-6), (out, ref)

    # Multi-block + explicit 2-way split (clamped overrun step) at tiny tiles.
    xs = jax.random.uniform(k5, (1, 3, 32, 32), dtype=jnp.float32)
    ys = jax.random.uniform(k6, (1, 3, 32, 32), dtype=jnp.float32)
    out = jax.block_until_ready(
        loss_with_gamma_correction(xs, ys, loss_type="MSE", tm=8, chunk_rows=8, nsplit=2)
    )
    ref = _reference(xs, ys, loss_type="MSE")
    assert jnp.allclose(out, ref, rtol=1e-5, atol=1e-6), (out, ref)

    print("KERNEL_OK")
</pallas_src>

<mosaic_0001>
module attributes {stable_mosaic.version = 11 : i64} {
  func.func @_loss_kernel(%arg0: i32, %arg1: i32, %arg2: memref<16x128xf32, #tpu.memory_space<vmem>>, %arg3: memref<16x128xf32, #tpu.memory_space<vmem>>, %arg4: memref<1x8x128xf32, #tpu.memory_space<vmem>>) attributes {dimension_semantics = [#tpu.dimension_semantics<parallel>, #tpu.dimension_semantics<arbitrary>], iteration_bounds = array<i64: 1, 1>, scalar_prefetch = 0 : i64, scratch_operands = 0 : i64, tpu.core_type = #tpu.core_type<tc>, window_params = [{transform_indices = @transform_0, window_bounds = array<i64: 16, 128>}, {transform_indices = @transform_1, window_bounds = array<i64: 16, 128>}, {transform_indices = @transform_2, window_bounds = array<i64: 1, 8, 128>}]} {
    %c0_i32 = arith.constant 0 : i32
    %0 = arith.cmpi eq, %arg1, %c0_i32 : i32
    %1 = arith.extui %0 : i1 to i32
    %c0_i32_0 = arith.constant 0 : i32
    %2 = arith.cmpi ne, %1, %c0_i32_0 : i32
    scf.if %2 {
      %cst_8 = arith.constant 0.000000e+00 : f32
      %15 = vector.broadcast %cst_8 : f32 to vector<1x8x128xf32>
      %c0 = arith.constant 0 : index
      %c0_9 = arith.constant 0 : index
      %c0_10 = arith.constant 0 : index
      %16 = vector.load %arg4[%c0, %c0_9, %c0_10] : memref<1x8x128xf32, #tpu.memory_space<vmem>>, vector<1x8x128xf32>
      tpu.vector_store %arg4[%c0, %c0_9, %c0_10], %15 {strides = array<i32>} : memref<1x8x128xf32, #tpu.memory_space<vmem>>, vector<1x8x128xf32>,
    } else {
    }
    %c1_i32 = arith.constant 1 : i32
    %3 = arith.muli %arg0, %c1_i32 : i32
    %4 = arith.addi %3, %arg1 : i32
    %c16_i32 = arith.constant 16 : i32
    %5 = arith.muli %4, %c16_i32 : i32
    %c16_i32_1 = arith.constant 16 : i32
    %6 = arith.subi %c16_i32_1, %5 : i32
    %c16_i32_2 = arith.constant 16 : i32
    %7 = arith.cmpi sge, %6, %c16_i32_2 : i32
    %8 = arith.extui %7 : i1 to i32
    %cst = arith.constant 1.1920929E-7 : f32
    %c0_i32_3 = arith.constant 0 : i32
    %9 = arith.cmpi ne, %8, %c0_i32_3 : i32
    scf.if %9 {
      %cst_8 = arith.constant 0.000000e+00 : f32
      %15 = vector.broadcast %cst_8 : f32 to vector<8x128xf32>
      %c0_i32_9 = arith.constant 0 : i32
      %c16_i32_10 = arith.constant 16 : i32
      %16 = arith.muli %c0_i32_9, %c16_i32_10 : i32
      %17 = tpu.assume_multiple %16, 16 : i32
      %18 = arith.index_cast %17 : i32 to index
      %c0 = arith.constant 0 : index
      %19 = vector.load %arg2[%18, %c0] : memref<16x128xf32, #tpu.memory_space<vmem>>, vector<16x128xf32>
      %cst_11 = arith.constant 1.292000e+01 : f32
      %20 = vector.broadcast %cst_11 : f32 to vector<16x128xf32>
      %21 = arith.mulf %20, %19 : vector<16x128xf32>
      %22 = vector.broadcast %cst : f32 to vector<16x128xf32>
      %23 = arith.maximumf %22, %19 : vector<16x128xf32>
      %24 = math.log %23 : vector<16x128xf32>
      %cst_12 = arith.constant 0.416666657 : f32
      %25 = vector.broadcast %cst_12 : f32 to vector<16x128xf32>
      %26 = arith.mulf %25, %24 : vector<16x128xf32>
      %27 = math.exp %26 : vector<16x128xf32>
      %cst_13 = arith.constant 1.055000e+00 : f32
      %28 = vector.broadcast %cst_13 : f32 to vector<16x128xf32>
      %29 = arith.mulf %28, %27 : vector<16x128xf32>
      %cst_14 = arith.constant 5.500000e-02 : f32
      %30 = vector.broadcast %cst_14 : f32 to vector<16x128xf32>
      %31 = arith.subf %29, %30 : vector<16x128xf32>
      %cst_15 = arith.constant 3.130800e-03 : f32
      %32 = vector.broadcast %cst_15 : f32 to vector<16x128xf32>
      %33 = arith.cmpf ole, %19, %32 : vector<16x128xf32>
      %34 = arith.select %33, %21, %31 : vector<16x128xi1>, vector<16x128xf32>
      %35 = arith.index_cast %17 : i32 to index
      %c0_16 = arith.constant 0 : index
      %36 = vector.load %arg3[%35, %c0_16] : memref<16x128xf32, #tpu.memory_space<vmem>>, vector<16x128xf32>
      %cst_17 = arith.constant 1.292000e+01 : f32
      %37 = vector.broadcast %cst_17 : f32 to vector<16x128xf32>
      %38 = arith.mulf %37, %36 : vector<16x128xf32>
      %39 = vector.broadcast %cst : f32 to vector<16x128xf32>
      %40 = arith.maximumf %39, %36 : vector<16x128xf32>
      %41 = math.log %40 : vector<16x128xf32>
      %cst_18 = arith.constant 0.416666657 : f32
      %42 = vector.broadcast %cst_18 : f32 to vector<16x128xf32>
      %43 = arith.mulf %42, %41 : vector<16x128xf32>
      %44 = math.exp %43 : vector<16x128xf32>
      %cst_19 = arith.constant 1.055000e+00 : f32
      %45 = vector.broadcast %cst_19 : f32 to vector<16x128xf32>
      %46 = arith.mulf %45, %44 : vector<16x128xf32>
      %cst_20 = arith.constant 5.500000e-02 : f32
      %47 = vector.broadcast %cst_20 : f32 to vector<16x128xf32>
      %48 = arith.subf %46, %47 : vector<16x128xf32>
      %cst_21 = arith.constant 3.130800e-03 : f32
      %49 = vector.broadcast %cst_21 : f32 to vector<16x128xf32>
      %50 = arith.cmpf ole, %36, %49 : vector<16x128xf32>
      %51 = arith.select %50, %38, %48 : vector<16x128xi1>, vector<16x128xf32>
      %52 = arith.subf %34, %51 : vector<16x128xf32>
      %53 = math.absf %52 : vector<16x128xf32>
      %54 = vector.shape_cast %53 : vector<16x128xf32> to vector<2x8x128xf32>
      %cst_22 = arith.constant dense<0.000000e+00> : vector<8x128xf32>
      %55 = vector.multi_reduction <add>, %54, %cst_22 [0] : vector<2x8x128xf32> to vector<8x128xf32>
      %56 = arith.addf %15, %55 : vector<8x128xf32>
      %c1_i32_23 = arith.constant 1 : i32
      %c0_24 = arith.constant 0 : index
      %c0_25 = arith.constant 0 : index
      %c0_26 = arith.constant 0 : index
      %57 = vector.load %arg4[%c0_24, %c0_25, %c0_26] : memref<1x8x128xf32, #tpu.memory_space<vmem>>, vector<1x8x128xf32>
      %58 = vector.shape_cast %56 : vector<8x128xf32> to vector<1x8x128xf32>
      %59 = arith.addf %57, %58 : vector<1x8x128xf32>
      %c0_27 = arith.constant 0 : index
      %c0_28 = arith.constant 0 : index
      %c0_29 = arith.constant 0 : index
      %60 = vector.load %arg4[%c0_27, %c0_28, %c0_29] : memref<1x8x128xf32, #tpu.memory_space<vmem>>, vector<1x8x128xf32>
      tpu.vector_store %arg4[%c0_27, %c0_28, %c0_29], %59 {strides = array<i32>} : memref<1x8x128xf32, #tpu.memory_space<vmem>>, vector<1x8x128xf32>,
    } else {
    }
    %c0_i32_4 = arith.constant 0 : i32
    %10 = arith.cmpi sgt, %6, %c0_i32_4 : i32
    %c16_i32_5 = arith.constant 16 : i32
    %11 = arith.cmpi slt, %6, %c16_i32_5 : i32
    %12 = arith.andi %10, %11 : i1
    %13 = arith.extui %12 : i1 to i32
    %cst_6 = arith.constant 1.1920929E-7 : f32
    %c0_i32_7 = arith.constant 0 : i32
    %14 = arith.cmpi ne, %13, %c0_i32_7 : i32
    scf.if %14 {
      %cst_8 = arith.constant 0.000000e+00 : f32
      %15 = vector.broadcast %cst_8 : f32 to vector<8x128xf32>
      %c0_i32_9 = arith.constant 0 : i32
      %c16_i32_10 = arith.constant 16 : i32
      %16 = arith.muli %c0_i32_9, %c16_i32_10 : i32
      %17 = tpu.assume_multiple %16, 16 : i32
      %18 = arith.index_cast %17 : i32 to index
      %c0 = arith.constant 0 : index
      %19 = vector.load %arg2[%18, %c0] : memref<16x128xf32, #tpu.memory_space<vmem>>, vector<16x128xf32>
      %cst_11 = arith.constant 1.292000e+01 : f32
      %20 = vector.broadcast %cst_11 : f32 to vector<16x128xf32>
      %21 = arith.mulf %20, %19 : vector<16x128xf32>
      %22 = vector.broadcast %cst_6 : f32 to vector<16x128xf32>
      %23 = arith.maximumf %22, %19 : vector<16x128xf32>
      %24 = math.log %23 : vector<16x128xf32>
      %cst_12 = arith.constant 0.416666657 : f32
      %25 = vector.broadcast %cst_12 : f32 to vector<16x128xf32>
      %26 = arith.mulf %25, %24 : vector<16x128xf32>
      %27 = math.exp %26 : vector<16x128xf32>
      %cst_13 = arith.constant 1.055000e+00 : f32
      %28 = vector.broadcast %cst_13 : f32 to vector<16x128xf32>
      %29 = arith.mulf %28, %27 : vector<16x128xf32>
      %cst_14 = arith.constant 5.500000e-02 : f32
      %30 = vector.broadcast %cst_14 : f32 to vector<16x128xf32>
      %31 = arith.subf %29, %30 : vector<16x128xf32>
      %cst_15 = arith.constant 3.130800e-03 : f32
      %32 = vector.broadcast %cst_15 : f32 to vector<16x128xf32>
      %33 = arith.cmpf ole, %19, %32 : vector<16x128xf32>
      %34 = arith.select %33, %21, %31 : vector<16x128xi1>, vector<16x128xf32>
      %35 = arith.index_cast %17 : i32 to index
      %c0_16 = arith.constant 0 : index
      %36 = vector.load %arg3[%35, %c0_16] : memref<16x128xf32, #tpu.memory_space<vmem>>, vector<16x128xf32>
      %cst_17 = arith.constant 1.292000e+01 : f32
      %37 = vector.broadcast %cst_17 : f32 to vector<16x128xf32>
      %38 = arith.mulf %37, %36 : vector<16x128xf32>
      %39 = vector.broadcast %cst_6 : f32 to vector<16x128xf32>
      %40 = arith.maximumf %39, %36 : vector<16x128xf32>
      %41 = math.log %40 : vector<16x128xf32>
      %cst_18 = arith.constant 0.416666657 : f32
      %42 = vector.broadcast %cst_18 : f32 to vector<16x128xf32>
      %43 = arith.mulf %42, %41 : vector<16x128xf32>
      %44 = math.exp %43 : vector<16x128xf32>
      %cst_19 = arith.constant 1.055000e+00 : f32
      %45 = vector.broadcast %cst_19 : f32 to vector<16x128xf32>
      %46 = arith.mulf %45, %44 : vector<16x128xf32>
      %cst_20 = arith.constant 5.500000e-02 : f32
      %47 = vector.broadcast %cst_20 : f32 to vector<16x128xf32>
      %48 = arith.subf %46, %47 : vector<16x128xf32>
      %cst_21 = arith.constant 3.130800e-03 : f32
      %49 = vector.broadcast %cst_21 : f32 to vector<16x128xf32>
      %50 = arith.cmpf ole, %36, %49 : vector<16x128xf32>
      %51 = arith.select %50, %38, %48 : vector<16x128xi1>, vector<16x128xf32>
      %52 = arith.subf %34, %51 : vector<16x128xf32>
      %53 = math.absf %52 : vector<16x128xf32>
      %54 = tpu.iota {dimensions = array<i32: 0>} : vector<16x128xi32>
      %55 = vector.broadcast %17 : i32 to vector<16x128xi32>
      %56 = arith.addi %54, %55 : vector<16x128xi32>
      %57 = vector.broadcast %6 : i32 to vector<16x128xi32>
      %58 = arith.cmpi slt, %56, %57 : vector<16x128xi32>
      %cst_22 = arith.constant 0.000000e+00 : f32
      %59 = vector.broadcast %cst_22 : f32 to vector<16x128xf32>
      %60 = arith.select %58, %53, %59 : vector<16x128xi1>, vector<16x128xf32>
      %61 = vector.shape_cast %60 : vector<16x128xf32> to vector<2x8x128xf32>
      %cst_23 = arith.constant dense<0.000000e+00> : vector<8x128xf32>
      %62 = vector.multi_reduction <add>, %61, %cst_23 [0] : vector<2x8x128xf32> to vector<8x128xf32>
      %63 = arith.addf %15, %62 : vector<8x128xf32>
      %c1_i32_24 = arith.constant 1 : i32
      %c0_25 = arith.constant 0 : index
      %c0_26 = arith.constant 0 : index
      %c0_27 = arith.constant 0 : index
      %64 = vector.load %arg4[%c0_25, %c0_26, %c0_27] : memref<1x8x128xf32, #tpu.memory_space<vmem>>, vector<1x8x128xf32>
      %65 = vector.shape_cast %63 : vector<8x128xf32> to vector<1x8x128xf32>
      %66 = arith.addf %64, %65 : vector<1x8x128xf32>
      %c0_28 = arith.constant 0 : index
      %c0_29 = arith.constant 0 : index
      %c0_30 = arith.constant 0 : index
      %67 = vector.load %arg4[%c0_28, %c0_29, %c0_30] : memref<1x8x128xf32, #tpu.memory_space<vmem>>, vector<1x8x128xf32>
      tpu.vector_store %arg4[%c0_28, %c0_29, %c0_30], %66 {strides = array<i32>} : memref<1x8x128xf32, #tpu.memory_space<vmem>>, vector<1x8x128xf32>,
    } else {
    }
    return
  }
  func.func @transform_0(%arg0: i32, %arg1: i32) -> (i32, i32) {
    %c0_i32 = arith.constant 0 : i32
    %c0_i32_0 = arith.constant 0 : i32
    return %arg1, %c0_i32 : i32, i32
  }
  func.func @transform_1(%arg0: i32, %arg1: i32) -> (i32, i32) {
    %c0_i32 = arith.constant 0 : i32
    %c0_i32_0 = arith.constant 0 : i32
    return %arg1, %c0_i32 : i32, i32
  }
  func.func @transform_2(%arg0: i32, %arg1: i32) -> (i32, i32, i32) {
    %c0_i32 = arith.constant 0 : i32
    %c0_i32_0 = arith.constant 0 : i32
    %c0_i32_1 = arith.constant 0 : i32
    return %arg0, %c0_i32, %c0_i32_0 : i32, i32, i32
  }
}

</mosaic_0001>

<bundles_post_ra>
// kernel: tpu_custom_call.1
= control target key start
LH: loop header
LB: loop body
LE: loop exit
PB: predicated region body
PF: predicated region fallthrough
CT: control target
= control target key end

     0   :  { %7 = vsyncpa [#allocation3], 0  ;;  %s342_s0 = inlined_call_operand.hbm [shape: f32[16,128], index: 0, kind: input, shape index: {}]   ;;  %s343_s1 = inlined_call_operand.hbm [shape: f32[16,128], index: 1, kind: input, shape index: {}]   ;;  %s344_s2 = inlined_call_operand.hbm [shape: f32[1,8,128], index: 2, kind: output, shape index: {}]  }
   0x1   :  { %8 = vsyncpa [#allocation6], 0 }
   0x2   :  { %9 = vsyncpa [#allocation4], 0  ;;  %s14_s11 = sshll.u32 %s342_s0, 4  ;;  %s313_s12 = smov [#allocation2]   ;;  %s15_s11 = int_to_ptr.hbm [resolvable:$true] %s14_s11 }
   0x3   :  { %s16_s13 = sshll.u32 %s313_s12, 4  ;;  %s27_s16 = sshll.u32 %s343_s1, 4  ;;  %s17_s13 = int_to_ptr.vmem [resolvable:$true] %s16_s13  ;;  %s28_s16 = int_to_ptr.hbm [resolvable:$true] %s27_s16 }
   0x4   :  { %s314_s17 = smov 128   ;;  %s315_s18 = smov 8  }
   0x5   :  { %22 = dma.hbm_to_vmem [thread:$0]  %s15_s11, 256, %s17_s13, [#allocation3], %s314_s17, %s314_s17, %s315_s18  }
   0x6   :  { %s316_s19 = smov [#allocation5]  }
   0x7   :  { %s29_s20 = sshll.u32 %s316_s19, 4  ;;  %s30_s20 = int_to_ptr.vmem [resolvable:$true] %s29_s20 }
   0x8   :  { %35 = dma.hbm_to_vmem [thread:$0]  %s28_s16, 256, %s30_s20, [#allocation6], %s314_s17, %s314_s17, %s315_s18  }
   0x9   :  { %307 = dma.done.wait [#allocation3], 256  }
   0xa   :  { %308 = vsyncadd [#allocation3], 4294967040 }
   0xb   :  { %309 = dma.done.wait [#allocation6], 256  }
   0xc   :  { %310 = vsyncadd [#allocation6], 4294967040  ;;  %v56_v0 = vld [vmem:[#allocation2] sm:$0xff]  ;;  %v57_v1 = vld [vmem:[#allocation2 + $0x8] sm:$0xff]  ;;  %s317_s0 = smov [#allocation7]   ;;  %s194_s23 = sshll.u32 %s344_s2, 4  ;;  %s195_s23 = int_to_ptr.hbm [resolvable:$true] %s194_s23 }
   0xd   :  { %v80_v2 = vld [vmem:[#allocation5] sm:$0xff]  ;;  %v60_v3 = vmax.f32 %v56_v0, 1.1920929e-07  ;;  %v61_v4 = vmax.f32 %v57_v1, 1.1920929e-07  ;;  %v81_v5 = vld [vmem:[#allocation5 + $0x8] sm:$0xff]  ;;  %v58_v25 = vmul.f32 12.92, %v56_v0 }
   0xe   :  { %v84_v6 = vmax.f32 %v80_v2, 1.1920929e-07  ;;  %v85_v7 = vmax.f32 %v81_v5, 1.1920929e-07  ;;  %v59_v27 = vmul.f32 12.92, %v57_v1  ;;  %vm76_vm0 = vcmp.le.f32.partialorder %v56_v0, 0.0031308 }
   0xf   :  { %219 = vlog2.f32 %v60_v3  ;;  %vm77_vm1 = vcmp.le.f32.partialorder %v57_v1, 0.0031308  ;;  %v82_v31 = vmul.f32 12.92, %v80_v2  ;;  %v83_v34 = vmul.f32 12.92, %v81_v5 }
  0x10   :  { %221 = vlog2.f32 %v61_v4  ;;  %vm100_vm2 = vcmp.le.f32.partialorder %v80_v2, 0.0031308  ;;  %vm101_vm3 = vcmp.le.f32.partialorder %v81_v5, 0.0031308  ;;  %s192_s1 = sshll.u32 %s317_s0, 4  ;;  %s193_s1 = int_to_ptr.vmem [resolvable:$true] %s192_s1 }
  0x11   :  { %223 = vlog2.f32 %v84_v6 }
  0x12   :  { %225 = vlog2.f32 %v85_v7 }
  0x15   :  { %v220_v8 = vpop.eup %219 }
  0x16   :  { %v222_v9 = vpop.eup %221  ;;  %v63_v10 = vmul.f32 0.6931472, %v220_v8 }
  0x17   :  { %v224_v11 = vpop.eup %223  ;;  %v65_v12 = vmul.f32 0.6931472, %v222_v9 }
  0x18   :  { %v226_v13 = vpop.eup %225  ;;  %v66_v14 = vmul.f32 0.41666666, %v63_v10  ;;  %v87_v15 = vmul.f32 0.6931472, %v224_v11 }
  0x19   :  { %v67_v16 = vmul.f32 0.41666666, %v65_v12  ;;  %v89_v17 = vmul.f32 0.6931472, %v226_v13 }
  0x1a   :  { %v68_v18 = vmul.f32 1.442695, %v66_v14  ;;  %v90_v19 = vmul.f32 0.41666666, %v87_v15 }
  0x1b   :  { %v70_v20 = vmul.f32 1.442695, %v67_v16  ;;  %v91_v21 = vmul.f32 0.41666666, %v89_v17 }
  0x1c   :  { %227 = vpow2.f32 %v68_v18  ;;  %v92_v22 = vmul.f32 1.442695, %v90_v19 }
  0x1d   :  { %229 = vpow2.f32 %v70_v20  ;;  %v94_v23 = vmul.f32 1.442695, %v91_v21 }
  0x1e   :  { %231 = vpow2.f32 %v92_v22 }
  0x1f   :  { %233 = vpow2.f32 %v94_v23 }
  0x22   :  { %v228_v24 = vpop.eup %227 }
  0x23   :  { %v230_v26 = vpop.eup %229  ;;  %v72_v28 = vmul.f32 1.055, %v228_v24 }
  0x24   :  { %v232_v29 = vpop.eup %231  ;;  %v73_v30 = vmul.f32 1.055, %v230_v26 }
  0x25   :  { %v234_v32 = vpop.eup %233  ;;  %v205_v33 = vadd.f32 -0.055, %v72_v28  ;;  %v96_v35 = vmul.f32 1.055, %v232_v29 }
  0x26   :  { %v206_v36 = vadd.f32 -0.055, %v73_v30  ;;  %v97_v37 = vmul.f32 1.055, %v234_v32 }
  0x27   :  { %v78_v38 = vsel %vm76_vm0, %v58_v25, %v205_v33  ;;  %v207_v39 = vadd.f32 -0.055, %v96_v35 }
  0x28   :  { %v79_v40 = vsel %vm77_vm1, %v59_v27, %v206_v36  ;;  %v208_v41 = vadd.f32 -0.055, %v97_v37 }
  0x29   :  { %v102_v42 = vsel %vm100_vm2, %v82_v31, %v207_v39 }
  0x2a   :  { %v103_v43 = vsel %vm101_vm3, %v83_v34, %v208_v41  ;;  %v104_v44 = vsub.f32 %v78_v38, %v102_v42 }
  0x2b   :  { %v105_v45 = vsub.f32 %v79_v40, %v103_v43 }
  0x2c   :  { %v106_v46 = vand.u32 2147483647, %v104_v44 }
  0x2d   :  { %v107_v47 = vand.u32 2147483647, %v105_v45 }
  0x2f   :  { %v108_v48 = vadd.f32 %v107_v47, %v106_v46 }
  0x31   :  { %112 = vst [vmem:[#allocation7] sm:$0xff] %v108_v48 }
  0x32   :  { %197 = dma.vmem_to_hbm [thread:$0]  %s193_s1, 128, %s195_s23, [#allocation4]  }
  0x33   :  { %311 = dma.done.wait [#allocation4], 128  }
  0x34   :  { %312 = vsyncadd [#allocation4], 4294967168 }
  0x35   :  { %202 = vsyncpa [#allocation3], 1 }
  0x36   :  { %203 = vsyncpa [#allocation6], 1 }
  0x37   :  { %204 = vsyncpa [#allocation4], 1 }

</bundles_post_ra>
